<compile_context>
chip_gen: v7x
topology: tpu7x:2x2x1
jax: 0.10.0
libtpu: 0.0.40
codegen_flags: <defaults>
</compile_context>

<pallas_src>
import jax
import jax.numpy as jnp
from jax import lax
from jax.experimental import pallas as pl
from jax.experimental.pallas import tpu as pltpu

# ----- Module hyperparameters (CNNMLPBaseline defaults, small input) -----
INPUT_DIM = 4        # features per day
HIDDEN_CH = 64       # hidden_channels
LATENT_DIM = 64      # latent_dim
KERNEL_SIZE = 3      # kernel hard-codes 3 taps (prev / center / next)
NUM_LAYERS = 2       # kernel hard-codes 2 conv layers (module default)
MLP_HIDDEN = 32
PAD = KERNEL_SIZE // 2

BATCH = 2
SEQ = 8              # time window length

assert KERNEL_SIZE == 3 and NUM_LAYERS == 2, "kernel is specialized to the module defaults"


def cnn_mlp_kernel(x_ref, w1_ref, b1_ref, w2_ref, b2_ref,
                   wpm_ref, bpm_ref, wm2_ref, bm2_ref, out_ref):
    # x_ref: [B, Cin, T] in PyTorch NCW layout (no host-side transpose or pad).
    B, Cin, T = x_ref.shape
    H = w1_ref.shape[-1]
    BT = B * T
    f32 = jnp.float32

    # ---- NCW -> channels-last rows [B*T, Cin] entirely in-kernel.
    # Per-batch identity matmul using the A @ B.T contraction pattern
    # (same dot_general dims as q @ k.T), then an aligned row concat.
    rr = lax.broadcasted_iota(jnp.int32, (T, T), 0)
    cc = lax.broadcasted_iota(jnp.int32, (T, T), 1)
    eye_t = (rr == cc).astype(f32)                                   # [T, T]
    last_with_last = (((1,), (1,)), ((), ()))                        # contract last dims
    xt = jnp.concatenate(
        [lax.dot_general(eye_t, x_ref[b], last_with_last,
                         preferred_element_type=f32)                 # [T, Cin] = x[b].T
         for b in range(B)],
        axis=0)                                                      # [B*T, Cin]

    def im2col(a, ch):
        # [x_{t-1} | x_t | x_{t+1}] along channels; boundary taps zeroed per
        # batch window (replaces 'same' zero-padding and the VMEM scratch).
        ti = lax.broadcasted_iota(jnp.int32, (B, T, ch), 1).reshape(BT, ch)
        prev = jnp.where(ti == 0, 0.0, jnp.roll(a, 1, axis=0))       # x[t-1]
        nxt = jnp.where(ti == T - 1, 0.0, jnp.roll(a, -1, axis=0))   # x[t+1]
        return jnp.concatenate([prev, a, nxt], axis=1)               # [B*T, 3*ch]

    # ---- Conv layer 1 ('same', K=3) as ONE MXU matmul + bias + ReLU
    h1 = jnp.dot(im2col(xt, Cin), w1_ref[...], preferred_element_type=f32)
    h1 = jnp.maximum(h1 + b1_ref[...], 0.0)                          # [B*T, H]

    # ---- Conv layer 2: same scheme, values stay in vregs (no scratch round-trip)
    h2 = jnp.dot(im2col(h1, H), w2_ref[...], preferred_element_type=f32)
    h2 = jnp.maximum(h2 + b2_ref[...], 0.0)                          # [B*T, H]

    # ---- Global average pool over time, then fused (pool-linear ∘ MLP linear 1) + ReLU
    pooled = jnp.mean(h2.reshape(B, T, H), axis=1)                   # [B, H]
    m = jnp.maximum(
        jnp.dot(pooled, wpm_ref[...], preferred_element_type=f32) + bpm_ref[...],
        0.0)                                                         # [B, MLP_HIDDEN]

    # ---- Final Linear(MLP_HIDDEN -> 1) on the VPU (avoid degenerate MXU matmul)
    y = jnp.sum(m * wm2_ref[...], axis=1, keepdims=True) + bm2_ref[...]   # [B, 1]
    out_ref[...] = y.astype(out_ref.dtype)


def _full_spec(a):
    nd = a.ndim
    return pl.BlockSpec(a.shape, lambda i, _nd=nd: (0,) * _nd)


@jax.jit
def cnn_mlp_forward(x, kparams):
    """x: [B, input_dim, T]  (PyTorch NCW).  Returns [B, 1]."""
    B = x.shape[0]
    args = (x,
            kparams['w1c'], kparams['b1'], kparams['w2c'], kparams['b2'],
            kparams['wpm'], kparams['bpm'], kparams['wm2r'], kparams['bm2'])
    return pl.pallas_call(
        cnn_mlp_kernel,
        out_shape=jax.ShapeDtypeStruct((B, 1), jnp.float32),
        grid=(1,),
        in_specs=[_full_spec(a) for a in args],
        out_specs=pl.BlockSpec((B, 1), lambda i: (0, 0)),
        compiler_params=pltpu.CompilerParams(
            dimension_semantics=("arbitrary",)),
    )(*args)
    # TODO(synk): for real workloads (large batch of windows), grid over batch
    # tiles with weights resident (index_map -> block 0) and a "parallel" axis.


def prepare_params(p):
    """Raw module params -> kernel-ready params (done once, outside the forward)."""
    return {
        'w1c':  p['w1'].reshape(KERNEL_SIZE * INPUT_DIM, HIDDEN_CH),   # [K*Cin, H]
        'b1':   p['b1'],                                               # [1, H]
        'w2c':  p['w2'].reshape(KERNEL_SIZE * HIDDEN_CH, HIDDEN_CH),   # [K*H, H]
        'b2':   p['b2'],                                               # [1, H]
        'wpm':  p['wp'] @ p['wm1'],                                    # [H, M] (fused)
        'bpm':  p['bp'] @ p['wm1'] + p['bm1'],                         # [1, M] (fused)
        'wm2r': p['wm2'].T,                                            # [1, M]
        'bm2':  p['bm2'],                                              # [1, 1]
    }


def ref_forward(x, p):
    """Pure-JAX reference mirroring the PyTorch module semantics (unfused)."""
    def conv1d_same(inp, w, b):           # inp: [B, Cin, T], w: [K, Cin, Cout]
        w_oik = jnp.transpose(w, (2, 1, 0))  # -> [Cout, Cin, K]
        out = jax.lax.conv_general_dilated(
            inp, w_oik, window_strides=(1,), padding=((PAD, PAD),),
            dimension_numbers=('NCH', 'OIH', 'NCH'))
        return out + b.reshape(1, -1, 1)

    h = jax.nn.relu(conv1d_same(x, p['w1'], p['b1']))
    h = jax.nn.relu(conv1d_same(h, p['w2'], p['b2']))
    pooled = jnp.mean(h, axis=2)                     # [B, H]
    lat = pooled @ p['wp'] + p['bp']                 # [B, L]
    m = jax.nn.relu(lat @ p['wm1'] + p['bm1'])       # [B, M]
    return m @ p['wm2'] + p['bm2']                   # [B, 1]


def init_params(key):
    ks = jax.random.split(key, 11)
    init = lambda k, shape, s=0.1: (s * jax.random.normal(k, shape)).astype(jnp.float32)
    return {
        # conv weights stored as [K, Cin, Cout]; biases kept 2-D for TPU friendliness.
        'w1':  init(ks[0], (KERNEL_SIZE, INPUT_DIM, HIDDEN_CH)),
        'b1':  init(ks[1], (1, HIDDEN_CH)),
        'w2':  init(ks[2], (KERNEL_SIZE, HIDDEN_CH, HIDDEN_CH)),
        'b2':  init(ks[3], (1, HIDDEN_CH)),
        'wp':  init(ks[4], (HIDDEN_CH, LATENT_DIM)),
        'bp':  init(ks[5], (1, LATENT_DIM)),
        'wm1': init(ks[6], (LATENT_DIM, MLP_HIDDEN)),
        'bm1': init(ks[7], (1, MLP_HIDDEN)),
        'wm2': init(ks[8], (MLP_HIDDEN, 1)),
        'bm2': init(ks[9], (1, 1)),
    }, ks[10]


if __name__ == "__main__":
    params, xkey = init_params(jax.random.PRNGKey(0))
    x = jax.random.normal(xkey, (BATCH, INPUT_DIM, SEQ), dtype=jnp.float32)

    kparams = prepare_params(params)
    y = cnn_mlp_forward(x, kparams)
    y = jax.block_until_ready(y)

    y_ref = ref_forward(x, params)
    assert y.shape == (BATCH, 1)
    # Tolerance loosened slightly: wp@wm1 is algebraically fused (f32 rounding only).
    assert jnp.allclose(y, y_ref, rtol=1e-3, atol=1e-4), (y, y_ref)

    print("KERNEL_OK")
</pallas_src>

<mosaic_0001>
module attributes {stable_mosaic.version = 11 : i64} {
  func.func @cnn_mlp_kernel(%arg0: i32, %arg1: memref<2x4x8xf32, #tpu.memory_space<vmem>>, %arg2: memref<12x64xf32, #tpu.memory_space<vmem>>, %arg3: memref<1x64xf32, #tpu.memory_space<vmem>>, %arg4: memref<192x64xf32, #tpu.memory_space<vmem>>, %arg5: memref<1x64xf32, #tpu.memory_space<vmem>>, %arg6: memref<64x32xf32, #tpu.memory_space<vmem>>, %arg7: memref<1x32xf32, #tpu.memory_space<vmem>>, %arg8: memref<1x32xf32, #tpu.memory_space<vmem>>, %arg9: memref<1x1xf32, #tpu.memory_space<vmem>>, %arg10: memref<2x1xf32, #tpu.memory_space<vmem>>) attributes {dimension_semantics = [#tpu.dimension_semantics<arbitrary>], iteration_bounds = array<i64: 1>, scalar_prefetch = 0 : i64, scratch_operands = 0 : i64, tpu.core_type = #tpu.core_type<tc>, window_params = [{pipeline_mode = #tpu.pipeline_mode<synchronous>, transform_indices = @transform_0, window_bounds = array<i64: 2, 4, 8>}, {pipeline_mode = #tpu.pipeline_mode<synchronous>, transform_indices = @transform_1, window_bounds = array<i64: 12, 64>}, {pipeline_mode = #tpu.pipeline_mode<synchronous>, transform_indices = @transform_2, window_bounds = array<i64: 1, 64>}, {pipeline_mode = #tpu.pipeline_mode<synchronous>, transform_indices = @transform_3, window_bounds = array<i64: 192, 64>}, {pipeline_mode = #tpu.pipeline_mode<synchronous>, transform_indices = @transform_4, window_bounds = array<i64: 1, 64>}, {pipeline_mode = #tpu.pipeline_mode<synchronous>, transform_indices = @transform_5, window_bounds = array<i64: 64, 32>}, {pipeline_mode = #tpu.pipeline_mode<synchronous>, transform_indices = @transform_6, window_bounds = array<i64: 1, 32>}, {pipeline_mode = #tpu.pipeline_mode<synchronous>, transform_indices = @transform_7, window_bounds = array<i64: 1, 32>}, {pipeline_mode = #tpu.pipeline_mode<synchronous>, transform_indices = @transform_8, window_bounds = array<i64: 1, 1>}, {pipeline_mode = #tpu.pipeline_mode<synchronous>, transform_indices = @transform_9, window_bounds = array<i64: 2, 1>}]} {
    %0 = tpu.iota {dimensions = array<i32: 0>} : vector<8x8xi32>
    %1 = tpu.iota {dimensions = array<i32: 1>} : vector<8x8xi32>
    %2 = arith.cmpi eq, %0, %1 : vector<8x8xi32>
    %3 = arith.extui %2 : vector<8x8xi1> to vector<8x8xi32>
    %4 = arith.sitofp %3 : vector<8x8xi32> to vector<8x8xf32>
    %c0 = arith.constant 0 : index
    %c0_0 = arith.constant 0 : index
    %c0_1 = arith.constant 0 : index
    %5 = vector.load %arg1[%c0, %c0_0, %c0_1] : memref<2x4x8xf32, #tpu.memory_space<vmem>>, vector<1x4x8xf32>
    %6 = vector.shape_cast %5 : vector<1x4x8xf32> to vector<4x8xf32>
    %cst = arith.constant dense<0.000000e+00> : vector<8x4xf32>
    %7 = tpu.matmul %4, %6, %cst {dimension_numbers = #tpu.dot_dimension_numbers<[1], [1], [0], [0], [0, 0, 1, 0], [], []>} : vector<8x8xf32>, vector<4x8xf32>, vector<8x4xf32> -> vector<8x4xf32>
    %c1 = arith.constant 1 : index
    %c0_2 = arith.constant 0 : index
    %c0_3 = arith.constant 0 : index
    %8 = vector.load %arg1[%c1, %c0_2, %c0_3] : memref<2x4x8xf32, #tpu.memory_space<vmem>>, vector<1x4x8xf32>
    %9 = vector.shape_cast %8 : vector<1x4x8xf32> to vector<4x8xf32>
    %cst_4 = arith.constant dense<0.000000e+00> : vector<8x4xf32>
    %10 = tpu.matmul %4, %9, %cst_4 {dimension_numbers = #tpu.dot_dimension_numbers<[1], [1], [0], [0], [0, 0, 1, 0], [], []>} : vector<8x8xf32>, vector<4x8xf32>, vector<8x4xf32> -> vector<8x4xf32>
    %11 = tpu.concatenate %7, %10 in 0 : vector<8x4xf32>, vector<8x4xf32> -> vector<16x4xf32>
    %12 = tpu.iota {dimensions = array<i32: 1>} : vector<2x8x4xi32>
    %13 = vector.shape_cast %12 : vector<2x8x4xi32> to vector<16x4xi32>
    %c0_i32 = arith.constant 0 : i32
    %14 = vector.broadcast %c0_i32 : i32 to vector<16x4xi32>
    %15 = arith.cmpi eq, %13, %14 : vector<16x4xi32>
    %16 = vector.extract_strided_slice %11 {offsets = [15, 0], sizes = [1, 4], strides = [1, 1]} : vector<16x4xf32> to vector<1x4xf32>
    %17 = vector.extract_strided_slice %11 {offsets = [0, 0], sizes = [15, 4], strides = [1, 1]} : vector<16x4xf32> to vector<15x4xf32>
    %18 = tpu.concatenate %16, %17 in 0 : vector<1x4xf32>, vector<15x4xf32> -> vector<16x4xf32>
    %cst_5 = arith.constant 0.000000e+00 : f32
    %19 = vector.broadcast %cst_5 : f32 to vector<16x4xf32>
    %20 = arith.select %15, %19, %18 : vector<16x4xi1>, vector<16x4xf32>
    %c7_i32 = arith.constant 7 : i32
    %21 = vector.broadcast %c7_i32 : i32 to vector<16x4xi32>
    %22 = arith.cmpi eq, %13, %21 : vector<16x4xi32>
    %23 = vector.extract_strided_slice %11 {offsets = [1, 0], sizes = [15, 4], strides = [1, 1]} : vector<16x4xf32> to vector<15x4xf32>
    %24 = vector.extract_strided_slice %11 {offsets = [0, 0], sizes = [1, 4], strides = [1, 1]} : vector<16x4xf32> to vector<1x4xf32>
    %25 = tpu.concatenate %23, %24 in 0 : vector<15x4xf32>, vector<1x4xf32> -> vector<16x4xf32>
    %cst_6 = arith.constant 0.000000e+00 : f32
    %26 = vector.broadcast %cst_6 : f32 to vector<16x4xf32>
    %27 = arith.select %22, %26, %25 : vector<16x4xi1>, vector<16x4xf32>
    %28 = tpu.concatenate %20, %11, %27 in 1 : vector<16x4xf32>, vector<16x4xf32>, vector<16x4xf32> -> vector<16x12xf32>
    %c0_7 = arith.constant 0 : index
    %c0_8 = arith.constant 0 : index
    %29 = vector.load %arg2[%c0_7, %c0_8] : memref<12x64xf32, #tpu.memory_space<vmem>>, vector<12x64xf32>
    %cst_9 = arith.constant dense<0.000000e+00> : vector<16x64xf32>
    %30 = tpu.matmul %28, %29, %cst_9 {dimension_numbers = #tpu.dot_dimension_numbers<[1], [0], [0], [1], [0, 0, 1, 1], [], []>} : vector<16x12xf32>, vector<12x64xf32>, vector<16x64xf32> -> vector<16x64xf32>
    %c0_10 = arith.constant 0 : index
    %c0_11 = arith.constant 0 : index
    %31 = vector.load %arg3[%c0_10, %c0_11] : memref<1x64xf32, #tpu.memory_space<vmem>>, vector<1x64xf32>
    %32 = vector.broadcast %31 : vector<1x64xf32> to vector<16x64xf32>
    %33 = arith.addf %30, %32 : vector<16x64xf32>
    %cst_12 = arith.constant 0.000000e+00 : f32
    %34 = vector.broadcast %cst_12 : f32 to vector<16x64xf32>
    %35 = arith.maximumf %33, %34 : vector<16x64xf32>
    %36 = tpu.iota {dimensions = array<i32: 1>} : vector<2x8x64xi32>
    %37 = vector.shape_cast %36 : vector<2x8x64xi32> to vector<16x64xi32>
    %c0_i32_13 = arith.constant 0 : i32
    %38 = vector.broadcast %c0_i32_13 : i32 to vector<16x64xi32>
    %39 = arith.cmpi eq, %37, %38 : vector<16x64xi32>
    %40 = vector.extract_strided_slice %35 {offsets = [15, 0], sizes = [1, 64], strides = [1, 1]} : vector<16x64xf32> to vector<1x64xf32>
    %41 = vector.extract_strided_slice %35 {offsets = [0, 0], sizes = [15, 64], strides = [1, 1]} : vector<16x64xf32> to vector<15x64xf32>
    %42 = tpu.concatenate %40, %41 in 0 : vector<1x64xf32>, vector<15x64xf32> -> vector<16x64xf32>
    %cst_14 = arith.constant 0.000000e+00 : f32
    %43 = vector.broadcast %cst_14 : f32 to vector<16x64xf32>
    %44 = arith.select %39, %43, %42 : vector<16x64xi1>, vector<16x64xf32>
    %c7_i32_15 = arith.constant 7 : i32
    %45 = vector.broadcast %c7_i32_15 : i32 to vector<16x64xi32>
    %46 = arith.cmpi eq, %37, %45 : vector<16x64xi32>
    %47 = vector.extract_strided_slice %35 {offsets = [1, 0], sizes = [15, 64], strides = [1, 1]} : vector<16x64xf32> to vector<15x64xf32>
    %48 = vector.extract_strided_slice %35 {offsets = [0, 0], sizes = [1, 64], strides = [1, 1]} : vector<16x64xf32> to vector<1x64xf32>
    %49 = tpu.concatenate %47, %48 in 0 : vector<15x64xf32>, vector<1x64xf32> -> vector<16x64xf32>
    %cst_16 = arith.constant 0.000000e+00 : f32
    %50 = vector.broadcast %cst_16 : f32 to vector<16x64xf32>
    %51 = arith.select %46, %50, %49 : vector<16x64xi1>, vector<16x64xf32>
    %52 = tpu.concatenate %44, %35, %51 in 1 : vector<16x64xf32>, vector<16x64xf32>, vector<16x64xf32> -> vector<16x192xf32>
    %c0_17 = arith.constant 0 : index
    %c0_18 = arith.constant 0 : index
    %53 = vector.load %arg4[%c0_17, %c0_18] : memref<192x64xf32, #tpu.memory_space<vmem>>, vector<192x64xf32>
    %cst_19 = arith.constant dense<0.000000e+00> : vector<16x64xf32>
    %54 = tpu.matmul %52, %53, %cst_19 {dimension_numbers = #tpu.dot_dimension_numbers<[1], [0], [0], [1], [0, 0, 1, 1], [], []>} : vector<16x192xf32>, vector<192x64xf32>, vector<16x64xf32> -> vector<16x64xf32>
    %c0_20 = arith.constant 0 : index
    %c0_21 = arith.constant 0 : index
    %55 = vector.load %arg5[%c0_20, %c0_21] : memref<1x64xf32, #tpu.memory_space<vmem>>, vector<1x64xf32>
    %56 = vector.broadcast %55 : vector<1x64xf32> to vector<16x64xf32>
    %57 = arith.addf %54, %56 : vector<16x64xf32>
    %cst_22 = arith.constant 0.000000e+00 : f32
    %58 = vector.broadcast %cst_22 : f32 to vector<16x64xf32>
    %59 = arith.maximumf %57, %58 : vector<16x64xf32>
    %60 = vector.shape_cast %59 : vector<16x64xf32> to vector<2x8x64xf32>
    %cst_23 = arith.constant dense<0.000000e+00> : vector<2x64xf32>
    %61 = vector.multi_reduction <add>, %60, %cst_23 [1] : vector<2x8x64xf32> to vector<2x64xf32>
    %cst_24 = arith.constant 8.000000e+00 : f32
    %62 = vector.broadcast %cst_24 : f32 to vector<2x64xf32>
    %63 = arith.divf %61, %62 : vector<2x64xf32>
    %c0_25 = arith.constant 0 : index
    %c0_26 = arith.constant 0 : index
    %64 = vector.load %arg6[%c0_25, %c0_26] : memref<64x32xf32, #tpu.memory_space<vmem>>, vector<64x32xf32>
    %cst_27 = arith.constant dense<0.000000e+00> : vector<2x32xf32>
    %65 = tpu.matmul %63, %64, %cst_27 {dimension_numbers = #tpu.dot_dimension_numbers<[1], [0], [0], [1], [0, 0, 1, 1], [], []>} : vector<2x64xf32>, vector<64x32xf32>, vector<2x32xf32> -> vector<2x32xf32>
    %c0_28 = arith.constant 0 : index
    %c0_29 = arith.constant 0 : index
    %66 = vector.load %arg7[%c0_28, %c0_29] : memref<1x32xf32, #tpu.memory_space<vmem>>, vector<1x32xf32>
    %67 = vector.broadcast %66 : vector<1x32xf32> to vector<2x32xf32>
    %68 = arith.addf %65, %67 : vector<2x32xf32>
    %cst_30 = arith.constant 0.000000e+00 : f32
    %69 = vector.broadcast %cst_30 : f32 to vector<2x32xf32>
    %70 = arith.maximumf %68, %69 : vector<2x32xf32>
    %c0_31 = arith.constant 0 : index
    %c0_32 = arith.constant 0 : index
    %71 = vector.load %arg8[%c0_31, %c0_32] : memref<1x32xf32, #tpu.memory_space<vmem>>, vector<1x32xf32>
    %72 = vector.broadcast %71 : vector<1x32xf32> to vector<2x32xf32>
    %73 = arith.mulf %70, %72 : vector<2x32xf32>
    %cst_33 = arith.constant dense<0.000000e+00> : vector<2xf32>
    %74 = vector.multi_reduction <add>, %73, %cst_33 [1] : vector<2x32xf32> to vector<2xf32>
    %75 = vector.shape_cast %74 : vector<2xf32> to vector<2x1xf32>
    %c0_34 = arith.constant 0 : index
    %c0_35 = arith.constant 0 : index
    %76 = vector.load %arg9[%c0_34, %c0_35] : memref<1x1xf32, #tpu.memory_space<vmem>>, vector<1x1xf32>
    %77 = vector.broadcast %76 : vector<1x1xf32> to vector<2x1xf32>
    %78 = arith.addf %75, %77 : vector<2x1xf32>
    %c0_36 = arith.constant 0 : index
    %c0_37 = arith.constant 0 : index
    %79 = vector.load %arg10[%c0_36, %c0_37] : memref<2x1xf32, #tpu.memory_space<vmem>>, vector<2x1xf32>
    tpu.vector_store %arg10[%c0_36, %c0_37], %78 {strides = array<i32>} : memref<2x1xf32, #tpu.memory_space<vmem>>, vector<2x1xf32>,
    return
  }
  func.func @transform_0(%arg0: i32) -> (i32, i32, i32) {
    %c0_i32 = arith.constant 0 : i32
    %c0_i32_0 = arith.constant 0 : i32
    %c0_i32_1 = arith.constant 0 : i32
    %c0_i32_2 = arith.constant 0 : i32
    return %c0_i32, %c0_i32_0, %c0_i32_1 : i32, i32, i32
  }
  func.func @transform_1(%arg0: i32) -> (i32, i32) {
    %c0_i32 = arith.constant 0 : i32
    %c0_i32_0 = arith.constant 0 : i32
    %c0_i32_1 = arith.constant 0 : i32
    return %c0_i32, %c0_i32_0 : i32, i32
  }
  func.func @transform_2(%arg0: i32) -> (i32, i32) {
    %c0_i32 = arith.constant 0 : i32
    %c0_i32_0 = arith.constant 0 : i32
    %c0_i32_1 = arith.constant 0 : i32
    return %c0_i32, %c0_i32_0 : i32, i32
  }
  func.func @transform_3(%arg0: i32) -> (i32, i32) {
    %c0_i32 = arith.constant 0 : i32
    %c0_i32_0 = arith.constant 0 : i32
    %c0_i32_1 = arith.constant 0 : i32
    return %c0_i32, %c0_i32_0 : i32, i32
  }
  func.func @transform_4(%arg0: i32) -> (i32, i32) {
    %c0_i32 = arith.constant 0 : i32
    %c0_i32_0 = arith.constant 0 : i32
    %c0_i32_1 = arith.constant 0 : i32
    return %c0_i32, %c0_i32_0 : i32, i32
  }
  func.func @transform_5(%arg0: i32) -> (i32, i32) {
    %c0_i32 = arith.constant 0 : i32
    %c0_i32_0 = arith.constant 0 : i32
    %c0_i32_1 = arith.constant 0 : i32
    return %c0_i32, %c0_i32_0 : i32, i32
  }
  func.func @transform_6(%arg0: i32) -> (i32, i32) {
    %c0_i32 = arith.constant 0 : i32
    %c0_i32_0 = arith.constant 0 : i32
    %c0_i32_1 = arith.constant 0 : i32
    return %c0_i32, %c0_i32_0 : i32, i32
  }
  func.func @transform_7(%arg0: i32) -> (i32, i32) {
    %c0_i32 = arith.constant 0 : i32
    %c0_i32_0 = arith.constant 0 : i32
    %c0_i32_1 = arith.constant 0 : i32
    return %c0_i32, %c0_i32_0 : i32, i32
  }
  func.func @transform_8(%arg0: i32) -> (i32, i32) {
    %c0_i32 = arith.constant 0 : i32
    %c0_i32_0 = arith.constant 0 : i32
    %c0_i32_1 = arith.constant 0 : i32
    return %c0_i32, %c0_i32_0 : i32, i32
  }
  func.func @transform_9(%arg0: i32) -> (i32, i32) {
    %c0_i32 = arith.constant 0 : i32
    %c0_i32_0 = arith.constant 0 : i32
    %c0_i32_1 = arith.constant 0 : i32
    return %c0_i32, %c0_i32_0 : i32, i32
  }
}

</mosaic_0001>

<bundles_post_ra>
// kernel: cnn_mlp_forward.1
= control target key start
LH: loop header
LB: loop body
LE: loop exit
PB: predicated region body
PF: predicated region fallthrough
CT: control target
= control target key end

     0   :  { %vm42_vm0 = vcmask 64512   ;;  %v34_v0 = vlaneseq  ;;  %v743_v1 = vmov 0.0   ;;  %vm744_vm1 = vmmov 0   ;;  %s749_s21 = smov 64   ;;  %s993_s0 = inlined_call_operand.vmem [shape: f32[2,4,8], index: 0, kind: input, shape index: {}]   ;;  %s994_s1 = inlined_call_operand.vmem [shape: f32[12,64], index: 1, kind: input, shape index: {}]   ;;  %s995_s3 = inlined_call_operand.vmem [shape: f32[192,64], index: 3, kind: input, shape index: {}]   ;;  %s996_s2 = inlined_call_operand.vmem [shape: f32[1,64], index: 2, kind: input, shape index: {}]   ;;  %s997_s5 = inlined_call_operand.vmem [shape: f32[64,32], index: 5, kind: input, shape index: {}]   ;;  %s998_s4 = inlined_call_operand.vmem [shape: f32[1,64], index: 4, kind: input, shape index: {}]   ;;  %s999_s8 = inlined_call_operand.<no memory space> [shape: f32[1,1], index: 8, kind: input, shape index: {}]   ;;  %s1000_s6 = inlined_call_operand.vmem [shape: f32[1,32], index: 6, kind: input, shape index: {}]   ;;  %s1001_s7 = inlined_call_operand.vmem [shape: f32[1,32], index: 7, kind: input, shape index: {}]   ;;  %s1002_s9 = inlined_call_operand.vmem [shape: f32[2,1], index: 9, kind: output, shape index: {}]  }
   0x1   :  { %646 = vmatprep.subr.mxu0 %v743_v1  ;;  %v41_v2 = vld [vmem:[%s993_s0] sm:$0xf]  ;;  %648 = vmatprep.mubr.msk.f32.mxu0 %vm744_vm1, %v743_v1  ;;  %v615_v5 = vld [vmem:[%s993_s0 + $0x4] sm:$0xf]  ;;  %v238_v8 = vld [vmem:[%s994_s1 + $0x8] sm:$0xf] }
   0x2   :  { %647 = vmatpush3.xpose.msk.msra.mxu0 %vm42_vm0, %v41_v2  ;;  %v807_v3 = vshrl.u32 %v34_v0, 7  ;;  %v37_v4 = vand.u32 127, %v34_v0  ;;  %v237_v7 = vld [vmem:[%s994_s1] sm:$0xff]  ;;  %vm253_vm3 = vcmask 1043456   ;;  %vm745_vm4 = vmmov 1   ;;  %s746_s0 = smov 4  }
   0x3   :  { %651 = vmatprep.subr.mxu0 %v743_v1  ;;  %v682_v9 = vpack.c.bf16 %v238_v8, %v237_v7  ;;  %vm683_vm5 = vmpackc.low %vm253_vm3, %vm745_vm4  ;;  %vm208_vm7 = vcmask 1046528   ;;  %vm199_vm8 = vcmask 1040384   ;;  %s747_s1 = smov 8   ;;  %vm232_vm10 = vcmask 31744   ;;  %v363_v35 = vld [vmem:[%s995_s3] sm:$0xff]  ;;  %v364_v36 = vld [vmem:[%s995_s3 + $0x8] sm:$0xff] }
   0x4   :  { %vm38_vm2 = vcmp.eq.s32.totalorder %v807_v3, %v37_v4  ;;  %vm207_vm6 = vcmp.eq.s32.totalorder %v807_v3, 7  ;;  %vm194_vm9 = vcmp.eq.s32.totalorder %v807_v3, 0  ;;  %vm246_vm11 = vcmask 97280   ;;  %v365_v37 = vld [vmem:[%s995_s3 + $0x10] sm:$0xff]  ;;  %v366_v39 = vld [vmem:[%s995_s3 + $0x18] sm:$0xff]  ;;  %v367_v41 = vld [vmem:[%s995_s3 + $0x20] sm:$0xff] }
   0x5   :  { %v612_v6 = vsel %vm38_vm2, 1.0, %v743_v1  ;;  %v748_v34 = vmov 0.0|0.0   ;;  %v689_v38 = vpack.c.bf16 %v364_v36, %v363_v35  ;;  %v692_v40 = vpack.c.bf16 %v366_v39, %v365_v37  ;;  %v368_v42 = vld [vmem:[%s995_s3 + $0x28] sm:$0xff]  ;;  %v369_v44 = vld [vmem:[%s995_s3 + $0x30] sm:$0xff]  ;;  %v370_v45 = vld [vmem:[%s995_s3 + $0x38] sm:$0xff] }
   0x6   :  { %649 = vmatmul.mubr.msk.f32.vlgmr.msra.gmra.mrb[0].mxu0 %vm42_vm0, %v612_v6  ;;  %688 = vmatprep.subr.bf16.mxu1 %v748_v34  ;;  %v695_v43 = vpack.c.bf16 %v368_v42, %v367_v41  ;;  %v698_v46 = vpack.c.bf16 %v370_v45, %v369_v44  ;;  %v371_v47 = vld [vmem:[%s995_s3 + $0x40] sm:$0xff]  ;;  %v372_v48 = vld [vmem:[%s995_s3 + $0x48] sm:$0xff]  ;;  %v373_v50 = vld [vmem:[%s995_s3 + $0x50] sm:$0xff]  ;;  %vm360_vm12 = vcmask 523264   ;;  %vm511_vm13 = vcmask 1041409  }
   0x7   :  { %652 = vmatpush3.xpose.msk.msra.mxu0 %vm42_vm0, %v615_v5  ;;  %653 = vmatprep.mubr.msk.f32.mxu0 %vm744_vm1, %v743_v1  ;;  %v701_v49 = vpack.c.bf16 %v372_v48, %v371_v47  ;;  %v374_v51 = vld [vmem:[%s995_s3 + $0x58] sm:$0xff]  ;;  %v375_v53 = vld [vmem:[%s995_s3 + $0x60] sm:$0xff]  ;;  %v376_v54 = vld [vmem:[%s995_s3 + $0x68] sm:$0xff]  ;;  %vm594_vm14 = vcmask 254976   ;;  %vm606_vm15 = vcmask 1024  }
   0x8   :  { %684 = vmatprep.subr.msk.bf16.mxu0 %vm683_vm5, %v682_v9  ;;  %690 = vmatpush1.bf16.msra.mxu1 %v689_v38  ;;  %v704_v52 = vpack.c.bf16 %v374_v51, %v373_v50  ;;  %v707_v55 = vpack.c.bf16 %v376_v54, %v375_v53  ;;  %v377_v56 = vld [vmem:[%s995_s3 + $0x70] sm:$0xff]  ;;  %v378_v57 = vld [vmem:[%s995_s3 + $0x78] sm:$0xff]  ;;  %v379_v59 = vld [vmem:[%s995_s3 + $0x80] sm:$0xff] }
   0x9   :  { %691 = vmatprep.subr.bf16.mxu1 %v748_v34  ;;  %v710_v58 = vpack.c.bf16 %v378_v57, %v377_v56  ;;  %v380_v60 = vld [vmem:[%s995_s3 + $0x88] sm:$0xff]  ;;  %v381_v62 = vld [vmem:[%s995_s3 + $0x90] sm:$0xff]  ;;  %v382_v63 = vld [vmem:[%s995_s3 + $0x98] sm:$0xff] }
   0xa   :  { %654 = vmatmul.mubr.msk.f32.vlgmr.msra.gmra.mrb[2].mxu0 %vm42_vm0, %v612_v6  ;;  %v713_v61 = vpack.c.bf16 %v380_v60, %v379_v59  ;;  %v716_v0 = vpack.c.bf16 %v382_v63, %v381_v62  ;;  %v384_v2 = vld [vmem:[%s995_s3 + $0xa8] sm:$0xff]  ;;  %v385_v5 = vld [vmem:[%s995_s3 + $0xb0] sm:$0xff]  ;;  %v386_v6 = vld [vmem:[%s995_s3 + $0xb8] sm:$0xff] }
   0xb   :  { %687 = vmatpush3.bf16.msk.msra.mxu0 %vm683_vm5, %v682_v9  ;;  %v722_v7 = vpack.c.bf16 %v386_v6, %v385_v5  ;;  %v618_v8 = vld [vmem:[%s996_s2] ss:$0 sm:$0xff]  ;;  %v496_v3 = vld [vmem:[%s997_s5 + $0x10] sm:$0xff]  ;;  %v497_v35 = vld [vmem:[%s997_s5 + $0x18] sm:$0xff]  ;;  %v14_v5 = vstv %s999_s8 }
   0xc   :  { %724 = vmatprep.subr.bf16.mxu0 %v748_v34  ;;  %693 = vmatpush1.bf16.msra.mxu1 %v692_v40  ;;  %v728_v36 = vpack.c.bf16 %v497_v35, %v496_v3  ;;  %v498_v37 = vld [vmem:[%s997_s5 + $0x20] sm:$0xff]  ;;  %v499_v38 = vld [vmem:[%s997_s5 + $0x28] sm:$0xff]  ;;  %v500_v40 = vld [vmem:[%s997_s5 + $0x30] sm:$0xff]  ;;  %15 = vst [vmem:[#allocation2] sm:$0x1] %v14_v5 }
   0xd   :  { %694 = vmatprep.subr.bf16.mxu1 %v748_v34  ;;  %v731_v39 = vpack.c.bf16 %v499_v38, %v498_v37  ;;  %v501_v41 = vld [vmem:[%s997_s5 + $0x38] sm:$0xff]  ;;  %v625_v6 = vld [vmem:[%s1000_s6] ss:$0 sm:$0xff] }
   0xe   :  { %v734_v42 = vpack.c.bf16 %v501_v41, %v500_v40 }
  0x10   :  { %696 = vmatpush1.bf16.msra.mxu1 %v695_v43  ;;  %v622_v43 = vld [vmem:[%s998_s4] ss:$0 sm:$0xff] }
  0x11   :  { %697 = vmatprep.subr.bf16.mxu1 %v748_v34 }
  0x14   :  { %699 = vmatpush1.bf16.msra.mxu1 %v698_v46 }
  0x15   :  { %700 = vmatprep.subr.bf16.mxu1 %v748_v34 }
  0x18   :  { %702 = vmatpush1.bf16.msra.mxu1 %v701_v49 }
  0x19   :  { %703 = vmatprep.subr.bf16.mxu1 %v748_v34 }
  0x1c   :  { %705 = vmatpush1.bf16.msra.mxu1 %v704_v52 }
  0x1d   :  { %706 = vmatprep.subr.bf16.mxu1 %v748_v34 }
  0x20   :  { %708 = vmatpush1.bf16.msra.mxu1 %v707_v55 }
  0x21   :  { %709 = vmatprep.subr.bf16.mxu1 %v748_v34 }
  0x24   :  { %711 = vmatpush1.bf16.msra.mxu1 %v710_v58 }
  0x25   :  { %712 = vmatprep.subr.bf16.mxu1 %v748_v34 }
  0x28   :  { %714 = vmatpush1.bf16.msra.mxu1 %v713_v61 }
  0x29   :  { %715 = vmatprep.subr.bf16.mxu1 %v748_v34 }
  0x2c   :  { %717 = vmatpush1.bf16.msra.mxu1 %v716_v0 }
  0x2d   :  { %718 = vmatprep.subr.bf16.mxu1 %v748_v34 }
  0xd9   :  { %v115_v10 = vpop.f32.mrb[0].mxu0 }
  0xda   :  { %218 = vrot.lane.b32.xlu0 %v115_v10, %s746_s0  ;;  %v650_v11 = vpop.f32.mrb[1].mxu0  ;;  %v200_v13 = vrot.slane %v115_v10, 7  ;;  %v209_v14 = vrot.slane %v115_v10, 1 }
  0xdd   :  { %v190_v12 = vpop.f32.mrb[2].mxu0 }
  0xde   :  { %v196_v15 = vrot.slane %v190_v12, 7  ;;  %v210_v16 = vrot.slane %v190_v12, 1  ;;  %220 = vrot.lane.b32.xlu0 %v190_v12, %s746_s0  ;;  %v655_v17 = vpop.f32.mrb[3].mxu0 }
  0xe0   :  { %v211_v18 = vsel %vm208_vm7, %v209_v14, %v210_v16  ;;  %v215_v19 = vsel %vm208_vm7, %v210_v16, %v209_v14  ;;  %v204_v20 = vsel %vm199_vm8, %v196_v15, %v200_v13  ;;  %v201_v21 = vsel %vm199_vm8, %v200_v13, %v196_v15 }
  0xe1   :  { %v216_v22 = vsel %vm207_vm6, 0.0, %v211_v18  ;;  %v217_v23 = vsel %vm207_vm6, 0.0, %v215_v19  ;;  %v205_v25 = vsel %vm194_vm9, 0.0, %v204_v20  ;;  %v206_v30 = vsel %vm194_vm9, 0.0, %v201_v21 }
  0xe2   :  { %226 = vrot.lane.b32.xlu1 %v216_v22, %s747_s1 }
  0xe6   :  { %228 = vrot.lane.b32.xlu1 %v217_v23, %s747_s1 }
 0x14c   :  { %v219_v24 = vpop.permute.xlu0 %218 }
 0x14d   :  { %v233_v26 = vsel %vm232_vm10, %v205_v25, %v219_v24 }
 0x150   :  { %v221_v28 = vpop.permute.xlu0 %220 }
 0x151   :  { %v234_v31 = vsel %vm232_vm10, %v206_v30, %v221_v28 }
 0x154   :  { %v227_v27 = vpop.permute.xlu1 %226 }
 0x155   :  { %v235_v29 = vsel %vm42_vm0, %v233_v26, %v227_v27 }
 0x156   :  { %660 = vmatprep.mubr.msk.f32.mxu0 %vm246_vm11, %v235_v29 }
 0x158   :  { %v229_v32 = vpop.permute.xlu1 %228 }
 0x159   :  { %v236_v33 = vsel %vm42_vm0, %v234_v31, %v229_v32  ;;  %v494_v31 = vld [vmem:[%s997_s5] sm:$0xff]  ;;  %v495_v32 = vld [vmem:[%s997_s5 + $0x8] sm:$0xff] }
 0x15a   :  { %661 = vmatmul.mubr.msk.f32.vlgmr.msra.gmra.mrb[4].mxu0 %vm246_vm11, %v236_v33  ;;  %v725_v33 = vpack.c.bf16 %v495_v32, %v494_v31 }
 0x15b   :  { %679 = vmatprep.mubr.msk.f32.mxu0 %vm744_vm1, %v743_v1  ;;  %v383_v1 = vld [vmem:[%s995_s3 + $0xa0] sm:$0xff] }
 0x15c   :  { %v719_v4 = vpack.c.bf16 %v384_v2, %v383_v1  ;;  %726 = vmatpush3.bf16.msra.mxu0 %v725_v33 }
 0x15d   :  { %727 = vmatprep.subr.bf16.mxu0 %v748_v34 }
 0x15e   :  { %720 = vmatpush1.bf16.msra.mxu1 %v719_v4 }
 0x15f   :  { %721 = vmatprep.subr.bf16.mxu1 %v748_v34 }
 0x160   :  { %729 = vmatpush3.bf16.msra.mxu0 %v728_v36 }
 0x161   :  { %730 = vmatprep.subr.bf16.mxu0 %v748_v34 }
 0x162   :  { %723 = vmatpush1.bf16.msra.mxu1 %v722_v7 }
 0x164   :  { %732 = vmatpush3.bf16.msra.mxu0 %v731_v39 }
 0x165   :  { %733 = vmatprep.subr.bf16.mxu0 %v748_v34 }
 0x168   :  { %735 = vmatpush3.bf16.msra.mxu0 %v734_v42 }
 0x22d   :  { %v662_v9 = vpop.f32.mrb[4].mxu0 }
 0x22e   :  { %v329_v10 = vadd.f32 %v662_v9, %v618_v8  ;;  %v323_v11 = vpop.f32.mrb[5].mxu0 }
 0x22f   :  { %v324_v12 = vadd.f32 %v618_v8, %v323_v11 }
 0x230   :  { %v333_v13 = vmax.f32 %v329_v10, 0.0  ;;  %v627_v10 = vld [vmem:[%s1001_s7] ss:$0 sm:$0xff] }
 0x231   :  { %v332_v14 = vmax.f32 %v324_v12, 0.0 }
 0x232   :  { %v335_v15 = vrot.slane %v333_v13, 7  ;;  %v346_v16 = vrot.slane %v333_v13, 1  ;;  %356 = vrot.lane.b32.xlu1 %v333_v13, %s749_s21 }
 0x233   :  { %v338_v17 = vrot.slane %v332_v14, 7  ;;  %v345_v18 = vrot.slane %v332_v14, 1  ;;  %354 = vrot.lane.b32.xlu0 %v332_v14, %s749_s21  ;;  %v628_v14 = vld [vmem:[#allocation2] ss:$0 sm:$0xff] }
 0x235   :  { %v347_v19 = vsel %vm208_vm7, %v345_v18, %v346_v16  ;;  %v342_v20 = vsel %vm199_vm8, %v335_v15, %v338_v17  ;;  %v351_v21 = vsel %vm208_vm7, %v346_v16, %v345_v18  ;;  %v339_v22 = vsel %vm199_vm8, %v338_v17, %v335_v15 }
 0x236   :  { %v352_v23 = vsel %vm207_vm6, 0.0, %v347_v19  ;;  %v343_v25 = vsel %vm194_vm9, 0.0, %v342_v20  ;;  %v353_v28 = vsel %vm207_vm6, 0.0, %v351_v21  ;;  %v344_v29 = vsel %vm194_vm9, 0.0, %v339_v22 }
 0x237   :  { %623 = vmatprep.mubr.msk.f32.mxu1 %vm360_vm12, %v352_v23 }
 0x2a4   :  { %v357_v27 = vpop.permute.xlu1 %356 }
 0x2a5   :  { %v355_v24 = vpop.permute.xlu0 %354  ;;  %v362_v30 = vsel %vm360_vm12, %v344_v29, %v357_v27 }
 0x2a6   :  { %v361_v26 = vsel %vm360_vm12, %v343_v25, %v355_v24 }
 0x2a7   :  { %465 = vmatmul.mubr.f32.vlgmr.msra.gmra.mrb[0].mxu1 %v361_v26 }
 0x2a8   :  { %624 = vmatprep.mubr.msk.f32.mxu1 %vm360_vm12, %v353_v28 }
 0x2ab   :  { %470 = vmatmul.mubr.f32.gmra.mrb[2].mxu1 %v362_v30 }
 0x37a   :  { %v466_v44 = vpop.f32.mrb[0].mxu1 }
 0x37b   :  { %v467_v45 = vadd.f32 %v622_v43, %v466_v44  ;;  %v468_v46 = vpop.f32.mrb[1].mxu1 }
 0x37d   :  { %v475_v47 = vmax.f32 %v467_v45, 0.0 }
 0x37e   :  { %v471_v48 = vpop.f32.mrb[2].mxu1 }
 0x37f   :  { %v477_v34 = vsel %vm360_vm12, %v475_v47, 0.0  ;;  %v472_v49 = vadd.f32 %v622_v43, %v471_v48  ;;  %v473_v50 = vpop.f32.mrb[3].mxu1 }
 0x380   :  { %v478_v51 = vrot.slane %v477_v34, 4 }
 0x381   :  { %v476_v52 = vmax.f32 %v472_v49, 0.0 }
 0x382   :  { %v479_v53 = vadd.f32 %v478_v51, %v477_v34 }
 0x383   :  { %v484_v54 = vsel %vm360_vm12, %v476_v52, 0.0 }
 0x384   :  { %v480_v55 = vrot.slane %v479_v53, 2  ;;  %v485_v56 = vrot.slane %v484_v54, 4 }
 0x386   :  { %v481_v57 = vadd.f32 %v480_v55, %v479_v53  ;;  %v486_v58 = vadd.f32 %v485_v56, %v484_v54 }
 0x388   :  { %v482_v59 = vrot.slane %v481_v57, 1  ;;  %v487_v60 = vrot.slane %v486_v58, 2 }
 0x38a   :  { %v488_v61 = vadd.f32 %v487_v60, %v486_v58  ;;  %v483_v62 = vadd.f32 %v482_v59, %v481_v57 }
 0x38c   :  { %v489_v63 = vrot.slane %v488_v61, 1  ;;  %v492_v1 = vmul.f32 0.125, %v483_v62 }
 0x38e   :  { %v490_v0 = vadd.f32 %v489_v63, %v488_v61 }
 0x390   :  { %v493_v2 = vmul.f32 0.125, %v490_v0 }
 0x392   :  { %v512_v4 = vsel %vm511_vm13, %v493_v2, %v492_v1 }
 0x393   :  { %680 = vmatmul.mubr.msk.f32.vlgmr.msra.gmra.mrb[6].mxu0 %vm360_vm12, %v512_v4 }
 0x466   :  { %v581_v7 = vpop.f32.mrb[6].mxu0 }
 0x467   :  { %v582_v8 = vadd.f32 %v625_v6, %v581_v7  ;;  %v681_v9 = vpop.f32.mrb[7].mxu0 }
 0x469   :  { %v585_v11 = vmax.f32 %v582_v8, 0.0 }
 0x46b   :  { %v593_v12 = vmul.f32 %v627_v10, %v585_v11 }
 0x46d   :  { %v595_v13 = vsel %vm594_vm14, %v593_v12, 0.0 }
 0x46e   :  { %596 = vadd.xlane.f32.xlu0 %v595_v13 }
 0x4fb   :  { %v597_v15 = vpop.xlane.xlu0 %596 }
 0x4fc   :  { %v605_v16 = vadd.f32 %v628_v14, %v597_v15 }
 0x4fe   :  { %607 = vst.msk [vmem:[%s1002_s9] sm:$0x3] %vm606_vm15, %v605_v16 }

</bundles_post_ra>
